<compile_context>
chip_gen: v7x
topology: tpu7x:2x2x1
jax: 0.10.0
libtpu: 0.0.40
codegen_flags: <defaults>
</compile_context>

<pallas_src>
import jax
import jax.numpy as jnp
from jax.experimental import pallas as pl
from jax.experimental.pallas import tpu as pltpu

_LANE = 128
_SUBLANE = 8
_FACE_QUANTUM = _SUBLANE * _LANE          # 1024 faces = one full (8,128) tile
_MAX_TILE_FACES = 128 * 1024              # ~13 MiB double-buffered per block


def _face_normals_kernel(vf_ref, out_ref):
    # vf_ref : (1, 9, TS, 128)  row r = v*3 + k holds coordinate k of vertex-in-face v
    # out_ref: (1, 4, TS, 128)  rows 0..2 = normal components, row 3 = areas
    def g(v, k):
        return vf_ref[0, v * 3 + k]                      # (TS, 128), dense vregs

    # edge A = vf[..., 1] - vf[..., 0]; edge B = vf[..., 2] - vf[..., 1]
    # (last index = coordinate; the remaining size-3 axis is vertex-in-face,
    #  so the cross runs over the vertex-in-face axis, exactly as in PyTorch.)
    a0 = g(0, 1) - g(0, 0)
    a1 = g(1, 1) - g(1, 0)
    a2 = g(2, 1) - g(2, 0)
    b0 = g(0, 2) - g(0, 1)
    b1 = g(1, 2) - g(1, 1)
    b2 = g(2, 2) - g(2, 1)

    n0 = a1 * b2 - a2 * b1
    n1 = a2 * b0 - a0 * b2
    n2 = a0 * b1 - a1 * b0

    sumsq = n0 * n0 + n1 * n1 + n2 * n2
    norm = jnp.sqrt(sumsq)                               # ||n|| (EUP; hidden under HBM bound)
    inv = 1.0 / jnp.maximum(norm, 1e-6)                  # F.normalize(eps=1e-6) denominator

    out_ref[0, 0] = n0 * inv
    out_ref[0, 1] = n1 * inv
    out_ref[0, 2] = n2 * inv
    out_ref[0, 3] = norm * 0.5                           # exact ||n|| * 0.5 (>= 0, abs is a no-op)


def _plan_tiles(num_faces: int, batch: int):
    """Pick (tile_faces, padded_faces, num_tiles) with bounded padding waste."""
    f_min = max(num_faces, 1)
    num_tiles = pl.cdiv(f_min, _MAX_TILE_FACES)
    if batch == 1 and num_faces > 8 * _FACE_QUANTUM:
        num_tiles = max(num_tiles, 2)                    # keep v7x's 2nd TensorCore busy
    tile_faces = pl.cdiv(pl.cdiv(f_min, num_tiles), _FACE_QUANTUM) * _FACE_QUANTUM
    return tile_faces, num_tiles * tile_faces, num_tiles


def mesh_face_normals(vertices, faces):
    """vertices: [B, V, 3], faces: [1, F, 3] int -> {'normals': [B, F, 3], 'areas': [B, F]}."""
    faces_sq = faces.reshape(-1, 3)                      # == faces.squeeze() for the [1, F, 3] input
    B, V, _ = vertices.shape
    F = faces_sq.shape[0]

    tf, f_pad, num_tiles = _plan_tiles(F, B)
    ts = tf // _LANE                                     # sublanes per block (multiple of 8)
    n_rows = f_pad // _LANE                              # total sublane rows of the face axis

    # Flat gather indices built directly in the kernel's [9, F] layout.
    # TODO(synk): the data-dependent vertex gather stays as XLA glue; it is offered
    # to XLA for input fusion into the Pallas pipeline (allow_input_fusion), a
    # per-face in-kernel DMA gather is not worthwhile for this HBM-bound op.
    v_of_r = jnp.arange(9, dtype=jnp.int32) // 3         # [9] vertex-in-face of row r
    k_of_r = jnp.arange(9, dtype=jnp.int32) % 3          # [9] coordinate of row r
    faces_t = faces_sq.T.astype(jnp.int32)               # [3, F]
    idx = faces_t[v_of_r] * 3 + k_of_r[:, None]          # [9, F] flat index into V*3
    idx = jnp.pad(idx, ((0, 0), (0, f_pad - F)))         # pad -> vertex 0 (degenerate face)

    vert_flat = vertices.reshape(B, V * 3).astype(jnp.float32)
    vf = jnp.take(vert_flat, idx, axis=1)                # [B, 9, F_pad] -- already kernel layout
    vf = vf.reshape(B, 9, n_rows, _LANE)                 # free reshape: lane + sublane dense

    out = pl.pallas_call(
        _face_normals_kernel,
        out_shape=jax.ShapeDtypeStruct((B, 4, n_rows, _LANE), jnp.float32),
        grid=(B, num_tiles),
        in_specs=[pl.BlockSpec((1, 9, ts, _LANE), lambda b, t: (b, 0, t, 0))],
        out_specs=pl.BlockSpec((1, 4, ts, _LANE), lambda b, t: (b, 0, t, 0)),
        compiler_params=pltpu.CompilerParams(
            dimension_semantics=("parallel", "parallel"),
            allow_input_fusion=[True],
            vmem_limit_bytes=32 * 1024 * 1024,
        ),
    )(vf)

    # TODO(synk): the final [B, 3, F] -> [B, F, 3] relayout is required by the
    # module's output contract; a consumer accepting component-major normals
    # could skip this extra HBM pass entirely.
    normals = jnp.transpose(out[:, :3].reshape(B, 3, f_pad)[:, :, :F], (0, 2, 1))
    areas = out[:, 3].reshape(B, f_pad)[:, :F]
    return {"normals": normals, "areas": areas}


if __name__ == "__main__":
    key = jax.random.PRNGKey(0)
    kv, kf = jax.random.split(key)
    B, V, F = 2, 16, 8
    vertices = jax.random.normal(kv, (B, V, 3), dtype=jnp.float32)
    faces = jax.random.randint(kf, (1, F, 3), 0, V, dtype=jnp.int32)

    out = mesh_face_normals(vertices, faces)
    jax.block_until_ready(out)

    # pure-JAX reference (literal transcription of the PyTorch module)
    f = jnp.squeeze(faces)
    vf = vertices[:, f]                                  # [B, F, 3, 3]
    ea = vf[..., 1] - vf[..., 0]
    eb = vf[..., 2] - vf[..., 1]
    n = jnp.cross(ea, eb, axis=-1)
    nrm = jnp.linalg.norm(n, axis=-1)
    ref_normals = n / jnp.maximum(nrm, 1e-6)[..., None]
    ref_areas = jnp.abs(nrm * 0.5)

    assert out["normals"].shape == (B, F, 3) and out["areas"].shape == (B, F)
    assert jnp.allclose(out["normals"], ref_normals, atol=1e-5)
    assert jnp.allclose(out["areas"], ref_areas, atol=1e-5)
    print("KERNEL_OK")
</pallas_src>

<mosaic_0001>
module attributes {stable_mosaic.version = 11 : i64} {
  func.func @_face_normals_kernel(%arg0: i32, %arg1: i32, %arg2: memref<1x9x8x128xf32, #tpu.memory_space<vmem>>, %arg3: memref<1x4x8x128xf32, #tpu.memory_space<vmem>>) attributes {dimension_semantics = [#tpu.dimension_semantics<parallel>, #tpu.dimension_semantics<parallel>], iteration_bounds = array<i64: 2, 1>, scalar_prefetch = 0 : i64, scratch_operands = 0 : i64, tpu.core_type = #tpu.core_type<tc>, window_params = [{transform_indices = @transform_0, window_bounds = array<i64: 1, 9, 8, 128>}, {transform_indices = @transform_1, window_bounds = array<i64: 1, 4, 8, 128>}]} {
    %c0 = arith.constant 0 : index
    %c1 = arith.constant 1 : index
    %c0_0 = arith.constant 0 : index
    %c0_1 = arith.constant 0 : index
    %0 = vector.load %arg2[%c0, %c1, %c0_0, %c0_1] : memref<1x9x8x128xf32, #tpu.memory_space<vmem>>, vector<1x1x8x128xf32>
    %1 = vector.shape_cast %0 : vector<1x1x8x128xf32> to vector<8x128xf32>
    %c0_2 = arith.constant 0 : index
    %c0_3 = arith.constant 0 : index
    %c0_4 = arith.constant 0 : index
    %c0_5 = arith.constant 0 : index
    %2 = vector.load %arg2[%c0_2, %c0_3, %c0_4, %c0_5] : memref<1x9x8x128xf32, #tpu.memory_space<vmem>>, vector<1x1x8x128xf32>
    %3 = vector.shape_cast %2 : vector<1x1x8x128xf32> to vector<8x128xf32>
    %4 = arith.subf %1, %3 : vector<8x128xf32>
    %c0_6 = arith.constant 0 : index
    %c4 = arith.constant 4 : index
    %c0_7 = arith.constant 0 : index
    %c0_8 = arith.constant 0 : index
    %5 = vector.load %arg2[%c0_6, %c4, %c0_7, %c0_8] : memref<1x9x8x128xf32, #tpu.memory_space<vmem>>, vector<1x1x8x128xf32>
    %6 = vector.shape_cast %5 : vector<1x1x8x128xf32> to vector<8x128xf32>
    %c0_9 = arith.constant 0 : index
    %c3 = arith.constant 3 : index
    %c0_10 = arith.constant 0 : index
    %c0_11 = arith.constant 0 : index
    %7 = vector.load %arg2[%c0_9, %c3, %c0_10, %c0_11] : memref<1x9x8x128xf32, #tpu.memory_space<vmem>>, vector<1x1x8x128xf32>
    %8 = vector.shape_cast %7 : vector<1x1x8x128xf32> to vector<8x128xf32>
    %9 = arith.subf %6, %8 : vector<8x128xf32>
    %c0_12 = arith.constant 0 : index
    %c7 = arith.constant 7 : index
    %c0_13 = arith.constant 0 : index
    %c0_14 = arith.constant 0 : index
    %10 = vector.load %arg2[%c0_12, %c7, %c0_13, %c0_14] : memref<1x9x8x128xf32, #tpu.memory_space<vmem>>, vector<1x1x8x128xf32>
    %11 = vector.shape_cast %10 : vector<1x1x8x128xf32> to vector<8x128xf32>
    %c0_15 = arith.constant 0 : index
    %c6 = arith.constant 6 : index
    %c0_16 = arith.constant 0 : index
    %c0_17 = arith.constant 0 : index
    %12 = vector.load %arg2[%c0_15, %c6, %c0_16, %c0_17] : memref<1x9x8x128xf32, #tpu.memory_space<vmem>>, vector<1x1x8x128xf32>
    %13 = vector.shape_cast %12 : vector<1x1x8x128xf32> to vector<8x128xf32>
    %14 = arith.subf %11, %13 : vector<8x128xf32>
    %c0_18 = arith.constant 0 : index
    %c2 = arith.constant 2 : index
    %c0_19 = arith.constant 0 : index
    %c0_20 = arith.constant 0 : index
    %15 = vector.load %arg2[%c0_18, %c2, %c0_19, %c0_20] : memref<1x9x8x128xf32, #tpu.memory_space<vmem>>, vector<1x1x8x128xf32>
    %16 = vector.shape_cast %15 : vector<1x1x8x128xf32> to vector<8x128xf32>
    %c0_21 = arith.constant 0 : index
    %c1_22 = arith.constant 1 : index
    %c0_23 = arith.constant 0 : index
    %c0_24 = arith.constant 0 : index
    %17 = vector.load %arg2[%c0_21, %c1_22, %c0_23, %c0_24] : memref<1x9x8x128xf32, #tpu.memory_space<vmem>>, vector<1x1x8x128xf32>
    %18 = vector.shape_cast %17 : vector<1x1x8x128xf32> to vector<8x128xf32>
    %19 = arith.subf %16, %18 : vector<8x128xf32>
    %c0_25 = arith.constant 0 : index
    %c5 = arith.constant 5 : index
    %c0_26 = arith.constant 0 : index
    %c0_27 = arith.constant 0 : index
    %20 = vector.load %arg2[%c0_25, %c5, %c0_26, %c0_27] : memref<1x9x8x128xf32, #tpu.memory_space<vmem>>, vector<1x1x8x128xf32>
    %21 = vector.shape_cast %20 : vector<1x1x8x128xf32> to vector<8x128xf32>
    %c0_28 = arith.constant 0 : index
    %c4_29 = arith.constant 4 : index
    %c0_30 = arith.constant 0 : index
    %c0_31 = arith.constant 0 : index
    %22 = vector.load %arg2[%c0_28, %c4_29, %c0_30, %c0_31] : memref<1x9x8x128xf32, #tpu.memory_space<vmem>>, vector<1x1x8x128xf32>
    %23 = vector.shape_cast %22 : vector<1x1x8x128xf32> to vector<8x128xf32>
    %24 = arith.subf %21, %23 : vector<8x128xf32>
    %c0_32 = arith.constant 0 : index
    %c8 = arith.constant 8 : index
    %c0_33 = arith.constant 0 : index
    %c0_34 = arith.constant 0 : index
    %25 = vector.load %arg2[%c0_32, %c8, %c0_33, %c0_34] : memref<1x9x8x128xf32, #tpu.memory_space<vmem>>, vector<1x1x8x128xf32>
    %26 = vector.shape_cast %25 : vector<1x1x8x128xf32> to vector<8x128xf32>
    %c0_35 = arith.constant 0 : index
    %c7_36 = arith.constant 7 : index
    %c0_37 = arith.constant 0 : index
    %c0_38 = arith.constant 0 : index
    %27 = vector.load %arg2[%c0_35, %c7_36, %c0_37, %c0_38] : memref<1x9x8x128xf32, #tpu.memory_space<vmem>>, vector<1x1x8x128xf32>
    %28 = vector.shape_cast %27 : vector<1x1x8x128xf32> to vector<8x128xf32>
    %29 = arith.subf %26, %28 : vector<8x128xf32>
    %30 = arith.mulf %9, %29 : vector<8x128xf32>
    %31 = arith.mulf %14, %24 : vector<8x128xf32>
    %32 = arith.subf %30, %31 : vector<8x128xf32>
    %33 = arith.mulf %14, %19 : vector<8x128xf32>
    %34 = arith.mulf %4, %29 : vector<8x128xf32>
    %35 = arith.subf %33, %34 : vector<8x128xf32>
    %36 = arith.mulf %4, %24 : vector<8x128xf32>
    %37 = arith.mulf %9, %19 : vector<8x128xf32>
    %38 = arith.subf %36, %37 : vector<8x128xf32>
    %39 = arith.mulf %32, %32 : vector<8x128xf32>
    %40 = arith.mulf %35, %35 : vector<8x128xf32>
    %41 = arith.addf %39, %40 : vector<8x128xf32>
    %42 = arith.mulf %38, %38 : vector<8x128xf32>
    %43 = arith.addf %41, %42 : vector<8x128xf32>
    %44 = math.sqrt %43 : vector<8x128xf32>
    %cst = arith.constant 9.99999997E-7 : f32
    %45 = vector.broadcast %cst : f32 to vector<8x128xf32>
    %46 = arith.maximumf %44, %45 : vector<8x128xf32>
    %cst_39 = arith.constant 1.000000e+00 : f32
    %47 = vector.broadcast %cst_39 : f32 to vector<8x128xf32>
    %48 = arith.divf %47, %46 : vector<8x128xf32>
    %49 = arith.mulf %32, %48 : vector<8x128xf32>
    %c0_40 = arith.constant 0 : index
    %c0_41 = arith.constant 0 : index
    %c0_42 = arith.constant 0 : index
    %c0_43 = arith.constant 0 : index
    %50 = vector.load %arg3[%c0_40, %c0_41, %c0_42, %c0_43] : memref<1x4x8x128xf32, #tpu.memory_space<vmem>>, vector<1x1x8x128xf32>
    %51 = vector.shape_cast %50 : vector<1x1x8x128xf32> to vector<8x128xf32>
    %52 = vector.shape_cast %49 : vector<8x128xf32> to vector<1x1x8x128xf32>
    tpu.vector_store %arg3[%c0_40, %c0_41, %c0_42, %c0_43], %52 {strides = array<i32>} : memref<1x4x8x128xf32, #tpu.memory_space<vmem>>, vector<1x1x8x128xf32>,
    %53 = arith.mulf %35, %48 : vector<8x128xf32>
    %c0_44 = arith.constant 0 : index
    %c1_45 = arith.constant 1 : index
    %c0_46 = arith.constant 0 : index
    %c0_47 = arith.constant 0 : index
    %54 = vector.load %arg3[%c0_44, %c1_45, %c0_46, %c0_47] : memref<1x4x8x128xf32, #tpu.memory_space<vmem>>, vector<1x1x8x128xf32>
    %55 = vector.shape_cast %54 : vector<1x1x8x128xf32> to vector<8x128xf32>
    %56 = vector.shape_cast %53 : vector<8x128xf32> to vector<1x1x8x128xf32>
    tpu.vector_store %arg3[%c0_44, %c1_45, %c0_46, %c0_47], %56 {strides = array<i32>} : memref<1x4x8x128xf32, #tpu.memory_space<vmem>>, vector<1x1x8x128xf32>,
    %57 = arith.mulf %38, %48 : vector<8x128xf32>
    %c0_48 = arith.constant 0 : index
    %c2_49 = arith.constant 2 : index
    %c0_50 = arith.constant 0 : index
    %c0_51 = arith.constant 0 : index
    %58 = vector.load %arg3[%c0_48, %c2_49, %c0_50, %c0_51] : memref<1x4x8x128xf32, #tpu.memory_space<vmem>>, vector<1x1x8x128xf32>
    %59 = vector.shape_cast %58 : vector<1x1x8x128xf32> to vector<8x128xf32>
    %60 = vector.shape_cast %57 : vector<8x128xf32> to vector<1x1x8x128xf32>
    tpu.vector_store %arg3[%c0_48, %c2_49, %c0_50, %c0_51], %60 {strides = array<i32>} : memref<1x4x8x128xf32, #tpu.memory_space<vmem>>, vector<1x1x8x128xf32>,
    %cst_52 = arith.constant 5.000000e-01 : f32
    %61 = vector.broadcast %cst_52 : f32 to vector<8x128xf32>
    %62 = arith.mulf %44, %61 : vector<8x128xf32>
    %c0_53 = arith.constant 0 : index
    %c3_54 = arith.constant 3 : index
    %c0_55 = arith.constant 0 : index
    %c0_56 = arith.constant 0 : index
    %63 = vector.load %arg3[%c0_53, %c3_54, %c0_55, %c0_56] : memref<1x4x8x128xf32, #tpu.memory_space<vmem>>, vector<1x1x8x128xf32>
    %64 = vector.shape_cast %63 : vector<1x1x8x128xf32> to vector<8x128xf32>
    %65 = vector.shape_cast %62 : vector<8x128xf32> to vector<1x1x8x128xf32>
    tpu.vector_store %arg3[%c0_53, %c3_54, %c0_55, %c0_56], %65 {strides = array<i32>} : memref<1x4x8x128xf32, #tpu.memory_space<vmem>>, vector<1x1x8x128xf32>,
    return
  }
  func.func @transform_0(%arg0: i32, %arg1: i32) -> (i32, i32, i32, i32) {
    %c0_i32 = arith.constant 0 : i32
    %c0_i32_0 = arith.constant 0 : i32
    %c0_i32_1 = arith.constant 0 : i32
    return %arg0, %c0_i32, %arg1, %c0_i32_0 : i32, i32, i32, i32
  }
  func.func @transform_1(%arg0: i32, %arg1: i32) -> (i32, i32, i32, i32) {
    %c0_i32 = arith.constant 0 : i32
    %c0_i32_0 = arith.constant 0 : i32
    %c0_i32_1 = arith.constant 0 : i32
    return %arg0, %c0_i32, %arg1, %c0_i32_0 : i32, i32, i32, i32
  }
}

</mosaic_0001>

<bundles_post_ra>
// kernel: tpu_custom_call.1
= control target key start
LH: loop header
LB: loop body
LE: loop exit
PB: predicated region body
PF: predicated region fallthrough
CT: control target
= control target key end

     0   :  { %6 = vsyncpa [#allocation3], 0  ;;  %s713_s0 = inlined_call_operand.hbm [shape: f32[2,9,8,128], index: 0, kind: input, shape index: {}]   ;;  %s714_s1 = inlined_call_operand.hbm [shape: f32[2,4,8,128], index: 1, kind: output, shape index: {}]  }
   0x1   :  { %8 = vsyncpa [#allocation3 + $0x1], 0 }
   0x2   :  { %9 = vsyncpa [#allocation4], 0 }
   0x3   :  { %11 = vsyncpa [#allocation4 + $0x1], 0  ;;  %s537_s6 = smov 0   ;;  %s539_s7 = smov 0  }
   0x4   :  { %s541_s8 = smov 0   ;;  %s543_s9 = smov 0  }
   0x5   :  { %s545_s10 = smov 0   ;;  %s547_s11 = smov 0  }
   0x6 LB: > { %s310_s12 = sadd.s32 4294967295, %s519_s11   ;;  %s311_s13 = sadd.s32 4294967294, %s519_s11   ;;  %s519_s11 = sphi %s547_s11, %s17_s11   ;;  %s515_s10 = sphi %s545_s10, %s729_s10   ;;  %s511_s9 = sphi %s543_s9, %s728_s9   ;;  %s507_s8 = sphi %s541_s8, %s727_s8   ;;  %s503_s7 = sphi %s539_s7, %s726_s7   ;;  %s499_s6 = sphi %s537_s6, %s725_s6  }
   0x7   : > { %s29_s14 = sadd.s32 1, %s515_s10  ;;  %s38_s15 = sadd.s32 1, %s507_s8 }
   0x8   : > { %p31_p0 = scmp.ge.s32.totalorder %s29_s14, 2  ;;  %p45_p1 = scmp.ne.s32.totalorder %s507_s8, %s503_s7 }
   0x9   : > { %p46_p2 = scmp.eq.s32.totalorder %s519_s11, 0  ;;  %p51_p3 = scmp.ne.s32.totalorder %s503_s7, %s499_s6 }
   0xa   : > { %s731_s14 = smov (%p31_p0, %s29_s14), 0  ;;  %p52_p5 = scmp.eq.s32.totalorder %s310_s12, 0 }
   0xb   : > { %p578_p4 = por %p46_p2, %p45_p1  ;;  %s33_s17 = ssub.s32 %s515_s10, %s731_s14 }
   0xc   : > { %p77_p6 = scmp.eq.s32.totalorder %s310_s12, 1  ;;  %p36_p7 = scmp.eq.s32.totalorder %s33_s17, 0 }
   0xd   : > { %p584_p8 = por %p52_p5, %p51_p3  ;;  %p83_p10 = scmp.eq.s32.totalorder %s311_s13, 1 }
   0xe   : > { %p588_p9 = por %p77_p6, %p45_p1  ;;  %p349_p13 = scmp.lt.s32.totalorder %s519_s11, 2 }
   0xf   : > { %s593_s20 = scalar_select %p36_p7, %s507_s8, %s38_s15  }
  0x10   : > { %s718_s19 = scalar_select %p588_p9, 1, 0 }
  0x11   : > { %p595_p11 = por %p83_p10, %p51_p3  ;;  %s103_s22 = sand.u32 1, %s507_s8  }
  0x12   : > { %s334_s23 = smul.u32 72, %s103_s22  ;;  %p605_p0 = pnand %p349_p13, %p578_p4 }
  0x13   : > { %s719_s21 = scalar_select %p595_p11, 1, 0 }
  0x14   : > { %s335_s24 = smul.u32 1152, %s515_s10  ;;  %s107_s29 = scalar_lea.vmem [#allocation2], %s334_s23 }
  0x15   : > { %s115_s30 = sshll.u32 %s107_s29, 4  ;;  %s617_s2 = scalar_lea.sflag [#allocation3], %s103_s22  ;;  %s614_s30 = int_to_ptr.vmem [resolvable:$true] %s115_s30 }
  0x16   : > { %s612_s28 = scalar_lea.hbm %s713_s0, %s335_s24  ;;  %p409_p3 = pneg %p605_p0 }
  0x17   : > { %s407_s3 = scalar_lea.hbm %s612_s28, 1152  ;;  %s412_s12 = scalar_lea.hbm %s713_s0, 2304 }
  0x18   : > { %p408_p2 = scmp.ne.s32.totalorder %s612_s28, %s407_s3  ;;  %p413_p6 = scmp.lt.u32.totalorder %s612_s28, %s713_s0 }
  0x19   : > { %p414_p7 = scmp.lt.u32.totalorder %s412_s12, %s407_s3  ;;  %p416_p13 = scmp.lt.u32.totalorder %s407_s3, %s612_s28 }
  0x1a   : > { %p410_p4 = pnand %p409_p3, %p408_p2 }
  0x1b   : > { %p415_p10 = por %p414_p7, %p413_p6 }
  0x1c   : > { %p411_p5 = pneg %p410_p4 }
  0x1d   : > { %p417_p12 = por %p416_p13, %p415_p10 }
  0x1f   : > { %p418_p1 = pnand %p417_p12, %p411_p5 }
  0x21   : > { %421 = shalt.err (!%p418_p1)
}
  0x22   : > { %s422_s16 = scalar_lea.vmem %s614_s30, 1152  ;;  %s521_s17 = smov [#allocation2]  }
  0x23   : > { %p423_p2 = scmp.ne.s32.totalorder %s614_s30, %s422_s16  ;;  %s427_s22 = sshll.u32 %s521_s17, 4  ;;  %s428_s22 = int_to_ptr.vmem [resolvable:$false] %s427_s22 }
  0x24   : > { %s429_s23 = scalar_lea.vmem %s428_s22, 2304  ;;  %p430_p9 = scmp.lt.s32.totalorder %s614_s30, %s428_s22 }
  0x25   : > { %p425_p4 = pnand %p423_p2, %p409_p3  ;;  %p431_p6 = scmp.lt.s32.totalorder %s429_s23, %s422_s16 }
  0x27   : > { %p426_p11 = pneg %p425_p4  ;;  %p432_p7 = por %p431_p6, %p430_p9 }
  0x29   : > { %p433_p10 = pnand %p432_p7, %p426_p11 }
  0x2b   : > { %436 = shalt.err (!%p433_p10)
}
  0x2c   : > { %s522_s24 = smov 128   ;;  %s523_s26 = smov 8  }
  0x2d   : > { %344 = dma.hbm_to_vmem [thread:$0]  (!%p605_p0), %s612_s28, 1152, %s614_s30, %s617_s2, %s522_s24, %s522_s24, %s523_s26  }
  0x2e   : > { %p123_p12 = scmp.lt.s32.totalorder %s519_s11, 3  ;;  %p721_p1 = scmp.ge.s32.totalorder %s519_s11, 1 }
  0x30   : > { %p124_p3 = pnand %p721_p1, %p123_p12 }
  0x31   : > { %s649_s27 = sand.u32 (!%p124_p3), 1, %s503_s7  }
  0x32   : > { %127 = sbr.rel (%p124_p3) target bundleno = 120 (0x78), region = 24  ;;  %s130_s3 = scalar_lea.sflag (!%p124_p3), [#allocation3], %s649_s27 }
  0x33   : > { %s336_s29 = smul.u32 (!%p124_p3), 72, %s649_s27 }
  0x35   : > { %s133_s4 = scalar_lea.vmem (!%p124_p3), [#allocation2], %s336_s29 }
  0x39   : > { %490 = dma.done.wait (%p584_p8), %s130_s3, 1152  }
  0x3a   : > { %492 = vsyncadd (%p584_p8), %s130_s3, 4294966144  ;;  %v317_v0 = vld [vmem:[%s133_s4 + $0x8] sm:$0xff]  ;;  %v154_v1 = vld [vmem:[%s133_s4] sm:$0xff]  ;;  %s316_s18 = sshll.u32 %s649_s27, 5  ;;  %s333_s30 = sshll.u32 %s511_s9, 9 }
  0x3b   : > { %v318_v2 = vld [vmem:[%s133_s4 + $0x20] sm:$0xff]  ;;  %v155_v3 = vsub.f32 %v317_v0, %v154_v1  ;;  %v319_v4 = vld [vmem:[%s133_s4 + $0x18] sm:$0xff]  ;;  %v321_v6 = vld [vmem:[%s133_s4 + $0x30] sm:$0xff]  ;;  %s151_s25 = scalar_lea.vmem [#allocation5], %s316_s18  ;;  %s664_s12 = scalar_lea.hbm %s714_s1, %s333_s30 }
  0x3c   : > { %v320_v5 = vld [vmem:[%s133_s4 + $0x38] sm:$0xff]  ;;  %v160_v7 = vsub.f32 %v318_v2, %v319_v4  ;;  %v322_v9 = vld [vmem:[%s133_s4 + $0x10] sm:$0xff]  ;;  %v323_v10 = vld [vmem:[%s133_s4 + $0x28] sm:$0xff]  ;;  %s225_s28 = sshll.u32 %s151_s25, 4  ;;  %s211_s13 = scalar_lea.sflag [#allocation4], %s649_s27  ;;  %s659_s28 = int_to_ptr.vmem [resolvable:$true] %s225_s28 }
  0x3d   : > { %v165_v8 = vsub.f32 %v320_v5, %v321_v6  ;;  %v324_v11 = vld [vmem:[%s133_s4 + $0x40] sm:$0xff]  ;;  %v168_v12 = vsub.f32 %v322_v9, %v317_v0  ;;  %v171_v13 = vsub.f32 %v323_v10, %v318_v2  ;;  %s437_s15 = scalar_lea.vmem %s659_s28, 512  ;;  %p722_p9 = scmp.ne.s32.totalorder %s718_s19, 0 }
  0x3e   : > { %v174_v14 = vsub.f32 %v324_v11, %v320_v5  ;;  %p438_p8 = scmp.ne.s32.totalorder %s659_s28, %s437_s15  ;;  %s524_s9 = smov [#allocation5]  }
  0x3f   : > { %v176_v16 = vmul.f32 %v171_v13, %v165_v8  ;;  %v178_v17 = vmul.f32 %v168_v12, %v165_v8  ;;  %v181_v19 = vmul.f32 %v171_v13, %v155_v3  ;;  %v182_v20 = vmul.f32 %v168_v12, %v160_v7  ;;  %s441_s16 = sshll.u32 %s524_s9, 4  ;;  %s442_s16 = int_to_ptr.vmem [resolvable:$false] %s441_s16 }
  0x40   : > { %v175_v15 = vmul.f32 %v174_v14, %v160_v7  ;;  %v179_v18 = vmul.f32 %v174_v14, %v155_v3  ;;  %p439_p11 = pnand %p438_p8, %p722_p9  ;;  %s443_s17 = scalar_lea.vmem %s442_s16, 1024 }
  0x41   : > { %v183_v23 = vsub.f32 %v181_v19, %v182_v20  ;;  %p444_p5 = scmp.lt.s32.totalorder %s659_s28, %s442_s16  ;;  %p445_p13 = scmp.lt.s32.totalorder %s443_s17, %s437_s15 }
  0x42   : > { %v177_v21 = vsub.f32 %v175_v15, %v176_v16  ;;  %v180_v22 = vsub.f32 %v178_v17, %v179_v18  ;;  %p440_p0 = pneg %p439_p11 }
  0x43   : > { %v187_v26 = vmul.f32 %v183_v23, %v183_v23  ;;  %p446_p2 = por %p445_p13, %p444_p5 }
  0x44   : > { %v184_v24 = vmul.f32 %v177_v21, %v177_v21  ;;  %v185_v25 = vmul.f32 %v180_v22, %v180_v22 }
  0x45   : > { %p447_p4 = pnand %p446_p2, %p440_p0 }
  0x46   : > { %v186_v27 = vadd.f32 %v185_v25, %v184_v24 }
  0x48   : > { %v188_v28 = vadd.f32 %v187_v26, %v186_v27 }
  0x4a   : > { %403 = vrsqrt.f32 %v188_v28  ;;  %vm191_vm0 = vcmp.eq.f32.partialorder %v188_v28, inf  ;;  %v194_v30 = vand.u32 2147483648, %v188_v28  ;;  %vm193_vm1 = vcmp.eq.f32.partialorder %v188_v28, 0.0 }
  0x54   : > { %v404_v29 = vpop.eup %403 }
  0x55   : > { %v190_v31 = vmul.f32 %v404_v29, %v188_v28 }
  0x57   : > { %v192_v32 = vsel %vm191_vm0, %v188_v28, %v190_v31 }
  0x58   : > { %v195_v33 = vsel %vm193_vm1, %v194_v30, %v192_v32 }
  0x59   : > { %v196_v34 = vmax.f32 %v195_v33, 1e-06  ;;  %v207_v35 = vmul.f32 0.5, %v195_v33 }
  0x5b   : > { %405 = vrcp.f32 %v196_v34  ;;  %327 = vst [vmem:[%s151_s25 + $0x18] sm:$0xff] %v207_v35 }
  0x65   : > { %v406_v36 = vpop.eup %405 }
  0x66   : > { %v199_v37 = vmul.f32 %v406_v36, %v177_v21  ;;  %v201_v38 = vmul.f32 %v406_v36, %v180_v22  ;;  %v204_v39 = vmul.f32 %v406_v36, %v183_v23 }
  0x68   : > { %200 = vst [vmem:[%s151_s25] sm:$0xff] %v199_v37  ;;  %325 = vst [vmem:[%s151_s25 + $0x8] sm:$0xff] %v201_v38 }
  0x69   : > { %326 = vst [vmem:[%s151_s25 + $0x10] sm:$0xff] %v204_v39 }
  0x6a   : > { %450 = shalt.err (!%p447_p4)
}
  0x6b   : > { %s451_s22 = scalar_lea.hbm %s664_s12, 512  ;;  %s455_s26 = scalar_lea.hbm %s714_s1, 1024 }
  0x6c   : > { %p452_p6 = scmp.ne.s32.totalorder %s664_s12, %s451_s22  ;;  %p456_p12 = scmp.lt.u32.totalorder %s664_s12, %s714_s1 }
  0x6d   : > { %p457_p1 = scmp.lt.u32.totalorder %s455_s26, %s451_s22  ;;  %p459_p8 = scmp.lt.u32.totalorder %s451_s22, %s664_s12 }
  0x6e   : > { %p453_p7 = pnand %p452_p6, %p722_p9 }
  0x6f   : > { %p458_p3 = por %p457_p1, %p456_p12 }
  0x70   : > { %p454_p10 = pneg %p453_p7 }
  0x71   : > { %p460_p11 = por %p459_p8, %p458_p3 }
  0x73   : > { %p461_p0 = pnand %p460_p11, %p454_p10 }
  0x75   : > { %464 = shalt.err (!%p461_p0)
}
  0x76   : > { %s525_s4 = smov 128   ;;  %s526_s18 = smov 8  }
  0x77   : > { %339 = dma.vmem_to_hbm [thread:$0]  (%p722_p9), %s659_s28, 512, %s664_s12, %s211_s13, %s525_s4, %s525_s4, %s526_s18  }
  0x78 PF: > { %s240_s25 = sand.u32 1, %s499_s6   ;;  %p723_p5 = scmp.ne.s32.totalorder %s719_s21, 0 }
  0x79   : > { %p724_p13 = scmp.ge.s32.totalorder %s519_s11, 2  ;;  %s241_s30 = scalar_lea.sflag [#allocation4], %s240_s25 }
  0x7b   : > { %p346_p2 = pnand %p724_p13, %p723_p5 }
  0x7d   : > { %494 = dma.done.wait (!%p346_p2), %s241_s30, 512  }
  0x7e   : > { %496 = vsyncadd (!%p346_p2), %s241_s30, 4294966784  ;;  %s17_s11 = sadd.s32 1, %s519_s11   ;;  %s725_s6 = smov %s503_s7 }
  0x7f   : > { %p14_p4 = scmp.ge.s32.totalorder %s17_s11, 4   ;;  %s726_s7 = smov %s507_s8 }
  0x80   : > { %s727_s8 = smov %s593_s20  ;;  %s728_s9 = smov %s515_s10 }
  0x81   : > { %s729_s10 = smov %s731_s14  ;;  %16 = sbr.rel (!%p14_p4) target bundleno = 6 (0x6), region = 80 }
  0x88   :  { %246 = vsyncpa [#allocation3], 1 }
  0x89   :  { %248 = vsyncpa [#allocation3 + $0x1], 1 }
  0x8a   :  { %249 = vsyncpa [#allocation4], 1 }
  0x8b   :  { %251 = vsyncpa [#allocation4 + $0x1], 1 }

</bundles_post_ra>
